<compile_context>
chip_gen: v5e
topology: v5e:2x2
jax: 0.10.0
libtpu: 0.0.40
codegen_flags: <defaults>
</compile_context>

<pallas_src>
import functools

import jax
import jax.numpy as jnp
from jax import lax
from jax.experimental import pallas as pl
from jax.experimental.pallas import tpu as pltpu


_LOG_PI = 1.1447298858494002      # log(pi)
_LGAMMA_SHIFT = 7                 # upward-recurrence shift so Stirling is accurate


def _lgamma_diff_half(a):
    """lgamma(a) - lgamma(a + 0.5), elementwise, for a > 0 (float32).

    lgamma(a) = lgamma(a + k) - log(a (a+1) ... (a+k-1)) with k = 7, then
    Stirling's series at x >= 7, evaluated as a fused difference (the
    0.5*log(2*pi) constants cancel exactly and are omitted).
    """
    pa = a
    pb = a + 0.5
    for j in range(1, _LGAMMA_SHIFT):            # unrolled: cheap VALU work
        pa = pa * (a + jnp.float32(j))
        pb = pb * (a + jnp.float32(j + 0.5))
    x1 = a + jnp.float32(_LGAMMA_SHIFT)          # >= 7
    x2 = a + jnp.float32(_LGAMMA_SHIFT + 0.5)
    u1 = pl.reciprocal(x1, approx=True)          # EUP vrcp; error << tolerance
    u2 = pl.reciprocal(x2, approx=True)
    # Stirling (constant dropped -- cancels in the difference):
    #   lgamma(x) ~ (x - 0.5) log x - x + 1/(12 x) - 1/(360 x^3) + C
    s1 = (x1 - 0.5) * jnp.log(x1) - x1 + u1 * (1.0 / 12.0 - (u1 * u1) * (1.0 / 360.0))
    s2 = (x2 - 0.5) * jnp.log(x2) - x2 + u2 * (1.0 / 12.0 - (u2 * u2) * (1.0 / 360.0))
    return (s1 - s2) + jnp.log(pb / pa)


def _pose_nig_loss_kernel(mu_ref, alpha_ref, v_ref, beta_ref, gt_ref, out_ref, *,
                          beta_hyper, split, d, n_valid, tile_n, tiles_per_core):
    core = pl.program_id(0)
    step = pl.program_id(1)

    # Per-core accumulator lives in the resident (1,1,128) output block, which
    # is revisited across the "arbitrary" inner axis; zero it at step 0.
    @pl.when(step == 0)
    def _():
        out_ref[...] = jnp.zeros_like(out_ref)

    mu = mu_ref[...].astype(jnp.float32)        # (d, tile_n)
    alpha = alpha_ref[...].astype(jnp.float32)
    v = v_ref[...].astype(jnp.float32)
    beta = beta_ref[...].astype(jnp.float32)
    gt = gt_ref[...].astype(jnp.float32)

    diff = mu - gt
    omega = 2.0 * beta * (1.0 + v)
    nll = (0.5 * (jnp.float32(_LOG_PI) - jnp.log(v))       # 0.5*log(pi/v), no divide
           - alpha * jnp.log(omega)
           + (alpha + 0.5) * jnp.log(v * diff * diff + omega)
           + _lgamma_diff_half(alpha))
    reg = jnp.abs(diff) * (2.0 * v + alpha)
    total = nll + reg                                       # (d, tile_n) f32

    # Fold split/unsplit mean into per-element weights; mask lanes past N
    # (partial last tile and clamped duplicate tiles contribute exactly 0).
    row = lax.broadcasted_iota(jnp.int32, total.shape, 0)
    lane = lax.broadcasted_iota(jnp.int32, total.shape, 1)
    gcol = (core * tiles_per_core + step) * tile_n + lane
    valid = gcol < n_valid
    if split:
        w = jnp.where(row == d - 1,
                      jnp.float32(beta_hyper / n_valid),
                      jnp.float32(1.0 / (n_valid * (d - 1))))
    else:
        w = jnp.float32(1.0 / (n_valid * d))
    contrib = jnp.where(valid, total, jnp.float32(0.0)) * w
    out_ref[...] += jnp.sum(contrib)


def pose_nig_loss_old(pose_nig, pose_gt, *, split=True, beta=5.0,
                      tile_n=32768, n_cores=2):
    """Pallas implementation of PoseNIGLossOld.forward."""
    mu, alpha, v, b = (pose_nig['p_delta'], pose_nig['alpha'],
                       pose_nig['v'], pose_nig['beta'])
    pose_gt = jnp.asarray(pose_gt)
    d = int(pose_gt.shape[-1])
    if split and d < 2:
        raise ValueError("split=True requires pose dimension >= 2")

    tensors = []
    for name, t in (("p_delta", mu), ("alpha", alpha), ("v", v),
                    ("beta", b), ("pose_gt", pose_gt)):
        t = jnp.asarray(t)
        if t.shape != pose_gt.shape:
            raise ValueError(f"{name} shape {t.shape} != pose_gt shape {pose_gt.shape}")
        # Lane-dense repack: (..., D) -> (D, N); native dtype preserved.
        tensors.append(t.reshape(-1, d).T)

    n = int(tensors[0].shape[1])

    # Lane tile: full extent when it fits in one tile (any width is legal when
    # it equals the array dim); otherwise a multiple-of-128 tile with a masked
    # partial last block.
    tn = n if n <= tile_n else int(tile_n)
    tiles_total = int(pl.cdiv(n, tn))
    n_cores_eff = max(1, min(int(n_cores), tiles_total))   # no useless dup tiles
    tiles_per_core = int(pl.cdiv(tiles_total, n_cores_eff))

    def in_index(c, i):
        # Clamp so a trailing duplicated tile on the short core stays in
        # bounds; its contribution is masked out via the global column id.
        return (0, jnp.minimum(c * tiles_per_core + i, tiles_total - 1))

    kernel = functools.partial(
        _pose_nig_loss_kernel,
        beta_hyper=float(beta), split=bool(split), d=d,
        n_valid=n, tile_n=int(tn), tiles_per_core=int(tiles_per_core))

    partials = pl.pallas_call(
        kernel,
        out_shape=jax.ShapeDtypeStruct((n_cores_eff, 1, 128), jnp.float32),
        grid=(n_cores_eff, tiles_per_core),
        in_specs=[pl.BlockSpec((d, tn), in_index) for _ in range(5)],
        out_specs=pl.BlockSpec((1, 1, 128), lambda c, i: (c, 0, 0)),
        compiler_params=pltpu.CompilerParams(
            dimension_semantics=("parallel", "arbitrary"),
            vmem_limit_bytes=32 * 1024 * 1024),
    )(*tensors)

    # Each core's (already weight-normalized) partial is broadcast across the
    # 128 lanes of its row; take lane 0 and sum over cores.
    return jnp.sum(partials[:, 0, 0])


# ----------------------------------------------------------------------------
# Pure-JAX reference (lax.lgamma) for correctness checking.
# ----------------------------------------------------------------------------
def _reference(pose_nig, pose_gt, *, split=True, beta=5.0):
    mu, alpha, v, b = (pose_nig['p_delta'], pose_nig['alpha'],
                       pose_nig['v'], pose_nig['beta'])
    omega = 2.0 * b * (1.0 + v)
    nll = (0.5 * jnp.log(jnp.pi / v)
           - alpha * jnp.log(omega)
           + (alpha + 0.5) * jnp.log(v * (mu - pose_gt) ** 2 + omega)
           + lax.lgamma(alpha) - lax.lgamma(alpha + 0.5))
    reg = jnp.abs(mu - pose_gt) * (2.0 * v + alpha)
    if split:
        return ((nll[..., :-1] + reg[..., :-1]).mean()
                + beta * (nll[..., -1] + reg[..., -1]).mean())
    return (nll + reg).mean()


def _make_inputs(key, shape):
    k_mu, k_a, k_v, k_b, k_gt = jax.random.split(key, 5)
    pose_nig = {
        'p_delta': 0.1 * jax.random.normal(k_mu, shape, jnp.float32),
        # NIG parameterization: alpha > 1, v > 0, beta > 0.
        'alpha': 1.0 + jax.nn.softplus(jax.random.normal(k_a, shape, jnp.float32)),
        'v': jax.nn.softplus(jax.random.normal(k_v, shape, jnp.float32)),
        'beta': jax.nn.softplus(jax.random.normal(k_b, shape, jnp.float32)),
    }
    pose_gt = 0.1 * jax.random.normal(k_gt, shape, jnp.float32)
    return pose_nig, pose_gt


if __name__ == "__main__":
    key = jax.random.PRNGKey(0)
    k1, k2 = jax.random.split(key)

    # Small odometry-like shape: (batch, seq, pose_dim) = (2, 8, 4).
    pose_nig, pose_gt = _make_inputs(k1, (2, 8, 4))
    loss = jax.block_until_ready(
        pose_nig_loss_old(pose_nig, pose_gt, split=True, beta=5.0))
    ref = jax.block_until_ready(_reference(pose_nig, pose_gt, split=True, beta=5.0))
    assert jnp.allclose(loss, ref, rtol=2e-3, atol=2e-3), (loss, ref)

    # Exercise the multi-tile / partial-last-tile / clamped-duplicate-tile path
    # (tile_n deliberately small), in both split modes.
    pose_nig2, pose_gt2 = _make_inputs(k2, (3, 100, 4))   # N = 300 pose vectors
    for sp in (True, False):
        l2 = jax.block_until_ready(
            pose_nig_loss_old(pose_nig2, pose_gt2, split=sp, beta=5.0, tile_n=128))
        r2 = jax.block_until_ready(_reference(pose_nig2, pose_gt2, split=sp, beta=5.0))
        assert jnp.allclose(l2, r2, rtol=2e-3, atol=2e-3), (sp, l2, r2)

    print("KERNEL_OK")
</pallas_src>

<mosaic_0001>
module attributes {stable_mosaic.version = 11 : i64} {
  func.func @_pose_nig_loss_kernel(%arg0: i32, %arg1: i32, %arg2: memref<4x16xf32, #tpu.memory_space<vmem>>, %arg3: memref<4x16xf32, #tpu.memory_space<vmem>>, %arg4: memref<4x16xf32, #tpu.memory_space<vmem>>, %arg5: memref<4x16xf32, #tpu.memory_space<vmem>>, %arg6: memref<4x16xf32, #tpu.memory_space<vmem>>, %arg7: memref<1x1x128xf32, #tpu.memory_space<vmem>>) attributes {dimension_semantics = [#tpu.dimension_semantics<parallel>, #tpu.dimension_semantics<arbitrary>], iteration_bounds = array<i64: 1, 1>, scalar_prefetch = 0 : i64, scratch_operands = 0 : i64, tpu.core_type = #tpu.core_type<tc>, window_params = [{transform_indices = @transform_0, window_bounds = array<i64: 4, 16>}, {transform_indices = @transform_1, window_bounds = array<i64: 4, 16>}, {transform_indices = @transform_2, window_bounds = array<i64: 4, 16>}, {transform_indices = @transform_3, window_bounds = array<i64: 4, 16>}, {transform_indices = @transform_4, window_bounds = array<i64: 4, 16>}, {transform_indices = @transform_5, window_bounds = array<i64: 1, 1, 128>}]} {
    %c0_i32 = arith.constant 0 : i32
    %0 = arith.cmpi eq, %arg1, %c0_i32 : i32
    %1 = arith.extui %0 : i1 to i32
    %c0_i32_0 = arith.constant 0 : i32
    %2 = arith.cmpi ne, %1, %c0_i32_0 : i32
    scf.if %2 {
      %cst_47 = arith.constant 0.000000e+00 : f32
      %134 = vector.broadcast %cst_47 : f32 to vector<1x1x128xf32>
      %c0_48 = arith.constant 0 : index
      %c0_49 = arith.constant 0 : index
      %c0_50 = arith.constant 0 : index
      %135 = vector.load %arg7[%c0_48, %c0_49, %c0_50] : memref<1x1x128xf32, #tpu.memory_space<vmem>>, vector<1x1x128xf32>
      tpu.vector_store %arg7[%c0_48, %c0_49, %c0_50], %134 {strides = array<i32>} : memref<1x1x128xf32, #tpu.memory_space<vmem>>, vector<1x1x128xf32>,
    } else {
    }
    %c0 = arith.constant 0 : index
    %c0_1 = arith.constant 0 : index
    %3 = vector.load %arg2[%c0, %c0_1] : memref<4x16xf32, #tpu.memory_space<vmem>>, vector<4x16xf32>
    %c0_2 = arith.constant 0 : index
    %c0_3 = arith.constant 0 : index
    %4 = vector.load %arg3[%c0_2, %c0_3] : memref<4x16xf32, #tpu.memory_space<vmem>>, vector<4x16xf32>
    %c0_4 = arith.constant 0 : index
    %c0_5 = arith.constant 0 : index
    %5 = vector.load %arg4[%c0_4, %c0_5] : memref<4x16xf32, #tpu.memory_space<vmem>>, vector<4x16xf32>
    %c0_6 = arith.constant 0 : index
    %c0_7 = arith.constant 0 : index
    %6 = vector.load %arg5[%c0_6, %c0_7] : memref<4x16xf32, #tpu.memory_space<vmem>>, vector<4x16xf32>
    %c0_8 = arith.constant 0 : index
    %c0_9 = arith.constant 0 : index
    %7 = vector.load %arg6[%c0_8, %c0_9] : memref<4x16xf32, #tpu.memory_space<vmem>>, vector<4x16xf32>
    %8 = arith.subf %3, %7 : vector<4x16xf32>
    %cst = arith.constant 2.000000e+00 : f32
    %9 = vector.broadcast %cst : f32 to vector<4x16xf32>
    %10 = arith.mulf %9, %6 : vector<4x16xf32>
    %cst_10 = arith.constant 1.000000e+00 : f32
    %11 = vector.broadcast %cst_10 : f32 to vector<4x16xf32>
    %12 = arith.addf %11, %5 : vector<4x16xf32>
    %13 = arith.mulf %10, %12 : vector<4x16xf32>
    %14 = math.log %5 : vector<4x16xf32>
    %cst_11 = arith.constant 1.14472985 : f32
    %15 = vector.broadcast %cst_11 : f32 to vector<4x16xf32>
    %16 = arith.subf %15, %14 : vector<4x16xf32>
    %cst_12 = arith.constant 5.000000e-01 : f32
    %17 = vector.broadcast %cst_12 : f32 to vector<4x16xf32>
    %18 = arith.mulf %17, %16 : vector<4x16xf32>
    %19 = math.log %13 : vector<4x16xf32>
    %20 = arith.mulf %4, %19 : vector<4x16xf32>
    %21 = arith.subf %18, %20 : vector<4x16xf32>
    %cst_13 = arith.constant 5.000000e-01 : f32
    %22 = vector.broadcast %cst_13 : f32 to vector<4x16xf32>
    %23 = arith.addf %4, %22 : vector<4x16xf32>
    %24 = arith.mulf %5, %8 : vector<4x16xf32>
    %25 = arith.mulf %24, %8 : vector<4x16xf32>
    %26 = arith.addf %25, %13 : vector<4x16xf32>
    %27 = math.log %26 : vector<4x16xf32>
    %28 = arith.mulf %23, %27 : vector<4x16xf32>
    %29 = arith.addf %21, %28 : vector<4x16xf32>
    %cst_14 = arith.constant 5.000000e-01 : f32
    %30 = vector.broadcast %cst_14 : f32 to vector<4x16xf32>
    %31 = arith.addf %4, %30 : vector<4x16xf32>
    %cst_15 = arith.constant 1.000000e+00 : f32
    %32 = vector.broadcast %cst_15 : f32 to vector<4x16xf32>
    %33 = arith.addf %4, %32 : vector<4x16xf32>
    %34 = arith.mulf %4, %33 : vector<4x16xf32>
    %cst_16 = arith.constant 1.500000e+00 : f32
    %35 = vector.broadcast %cst_16 : f32 to vector<4x16xf32>
    %36 = arith.addf %4, %35 : vector<4x16xf32>
    %37 = arith.mulf %31, %36 : vector<4x16xf32>
    %cst_17 = arith.constant 2.000000e+00 : f32
    %38 = vector.broadcast %cst_17 : f32 to vector<4x16xf32>
    %39 = arith.addf %4, %38 : vector<4x16xf32>
    %40 = arith.mulf %34, %39 : vector<4x16xf32>
    %cst_18 = arith.constant 2.500000e+00 : f32
    %41 = vector.broadcast %cst_18 : f32 to vector<4x16xf32>
    %42 = arith.addf %4, %41 : vector<4x16xf32>
    %43 = arith.mulf %37, %42 : vector<4x16xf32>
    %cst_19 = arith.constant 3.000000e+00 : f32
    %44 = vector.broadcast %cst_19 : f32 to vector<4x16xf32>
    %45 = arith.addf %4, %44 : vector<4x16xf32>
    %46 = arith.mulf %40, %45 : vector<4x16xf32>
    %cst_20 = arith.constant 3.500000e+00 : f32
    %47 = vector.broadcast %cst_20 : f32 to vector<4x16xf32>
    %48 = arith.addf %4, %47 : vector<4x16xf32>
    %49 = arith.mulf %43, %48 : vector<4x16xf32>
    %cst_21 = arith.constant 4.000000e+00 : f32
    %50 = vector.broadcast %cst_21 : f32 to vector<4x16xf32>
    %51 = arith.addf %4, %50 : vector<4x16xf32>
    %52 = arith.mulf %46, %51 : vector<4x16xf32>
    %cst_22 = arith.constant 4.500000e+00 : f32
    %53 = vector.broadcast %cst_22 : f32 to vector<4x16xf32>
    %54 = arith.addf %4, %53 : vector<4x16xf32>
    %55 = arith.mulf %49, %54 : vector<4x16xf32>
    %cst_23 = arith.constant 5.000000e+00 : f32
    %56 = vector.broadcast %cst_23 : f32 to vector<4x16xf32>
    %57 = arith.addf %4, %56 : vector<4x16xf32>
    %58 = arith.mulf %52, %57 : vector<4x16xf32>
    %cst_24 = arith.constant 5.500000e+00 : f32
    %59 = vector.broadcast %cst_24 : f32 to vector<4x16xf32>
    %60 = arith.addf %4, %59 : vector<4x16xf32>
    %61 = arith.mulf %55, %60 : vector<4x16xf32>
    %cst_25 = arith.constant 6.000000e+00 : f32
    %62 = vector.broadcast %cst_25 : f32 to vector<4x16xf32>
    %63 = arith.addf %4, %62 : vector<4x16xf32>
    %64 = arith.mulf %58, %63 : vector<4x16xf32>
    %cst_26 = arith.constant 6.500000e+00 : f32
    %65 = vector.broadcast %cst_26 : f32 to vector<4x16xf32>
    %66 = arith.addf %4, %65 : vector<4x16xf32>
    %67 = arith.mulf %61, %66 : vector<4x16xf32>
    %cst_27 = arith.constant 7.000000e+00 : f32
    %68 = vector.broadcast %cst_27 : f32 to vector<4x16xf32>
    %69 = arith.addf %4, %68 : vector<4x16xf32>
    %cst_28 = arith.constant 7.500000e+00 : f32
    %70 = vector.broadcast %cst_28 : f32 to vector<4x16xf32>
    %71 = arith.addf %4, %70 : vector<4x16xf32>
    %72 = tpu.reciprocal %69 {approx = true} : vector<4x16xf32> -> vector<4x16xf32>
    %73 = tpu.reciprocal %71 {approx = true} : vector<4x16xf32> -> vector<4x16xf32>
    %cst_29 = arith.constant 5.000000e-01 : f32
    %74 = vector.broadcast %cst_29 : f32 to vector<4x16xf32>
    %75 = arith.subf %69, %74 : vector<4x16xf32>
    %76 = math.log %69 : vector<4x16xf32>
    %77 = arith.mulf %75, %76 : vector<4x16xf32>
    %78 = arith.subf %77, %69 : vector<4x16xf32>
    %79 = arith.mulf %72, %72 : vector<4x16xf32>
    %cst_30 = arith.constant 0.00277777785 : f32
    %80 = vector.broadcast %cst_30 : f32 to vector<4x16xf32>
    %81 = arith.mulf %79, %80 : vector<4x16xf32>
    %cst_31 = arith.constant 0.0833333358 : f32
    %82 = vector.broadcast %cst_31 : f32 to vector<4x16xf32>
    %83 = arith.subf %82, %81 : vector<4x16xf32>
    %84 = arith.mulf %72, %83 : vector<4x16xf32>
    %85 = arith.addf %78, %84 : vector<4x16xf32>
    %cst_32 = arith.constant 5.000000e-01 : f32
    %86 = vector.broadcast %cst_32 : f32 to vector<4x16xf32>
    %87 = arith.subf %71, %86 : vector<4x16xf32>
    %88 = math.log %71 : vector<4x16xf32>
    %89 = arith.mulf %87, %88 : vector<4x16xf32>
    %90 = arith.subf %89, %71 : vector<4x16xf32>
    %91 = arith.mulf %73, %73 : vector<4x16xf32>
    %cst_33 = arith.constant 0.00277777785 : f32
    %92 = vector.broadcast %cst_33 : f32 to vector<4x16xf32>
    %93 = arith.mulf %91, %92 : vector<4x16xf32>
    %cst_34 = arith.constant 0.0833333358 : f32
    %94 = vector.broadcast %cst_34 : f32 to vector<4x16xf32>
    %95 = arith.subf %94, %93 : vector<4x16xf32>
    %96 = arith.mulf %73, %95 : vector<4x16xf32>
    %97 = arith.addf %90, %96 : vector<4x16xf32>
    %98 = arith.subf %85, %97 : vector<4x16xf32>
    %99 = arith.divf %67, %64 : vector<4x16xf32>
    %100 = math.log %99 : vector<4x16xf32>
    %101 = arith.addf %98, %100 : vector<4x16xf32>
    %102 = arith.addf %29, %101 : vector<4x16xf32>
    %103 = math.absf %8 : vector<4x16xf32>
    %cst_35 = arith.constant 2.000000e+00 : f32
    %104 = vector.broadcast %cst_35 : f32 to vector<4x16xf32>
    %105 = arith.mulf %104, %5 : vector<4x16xf32>
    %106 = arith.addf %105, %4 : vector<4x16xf32>
    %107 = arith.mulf %103, %106 : vector<4x16xf32>
    %108 = arith.addf %102, %107 : vector<4x16xf32>
    %109 = tpu.iota {dimensions = array<i32: 0>} : vector<4x16xi32>
    %110 = tpu.iota {dimensions = array<i32: 1>} : vector<4x16xi32>
    %c1_i32 = arith.constant 1 : i32
    %111 = arith.muli %arg0, %c1_i32 : i32
    %112 = arith.addi %111, %arg1 : i32
    %c16_i32 = arith.constant 16 : i32
    %113 = arith.muli %112, %c16_i32 : i32
    %114 = vector.broadcast %113 : i32 to vector<4x16xi32>
    %115 = arith.addi %114, %110 : vector<4x16xi32>
    %c16_i32_36 = arith.constant 16 : i32
    %116 = vector.broadcast %c16_i32_36 : i32 to vector<4x16xi32>
    %117 = arith.cmpi slt, %115, %116 : vector<4x16xi32>
    %c3_i32 = arith.constant 3 : i32
    %118 = vector.broadcast %c3_i32 : i32 to vector<4x16xi32>
    %119 = arith.cmpi eq, %109, %118 : vector<4x16xi32>
    %cst_37 = arith.constant 3.125000e-01 : f32
    %cst_38 = arith.constant 0.020833334 : f32
    %120 = vector.broadcast %cst_37 : f32 to vector<4x16xf32>
    %121 = vector.broadcast %cst_38 : f32 to vector<4x16xf32>
    %122 = arith.select %119, %120, %121 : vector<4x16xi1>, vector<4x16xf32>
    %cst_39 = arith.constant 0.000000e+00 : f32
    %123 = vector.broadcast %cst_39 : f32 to vector<4x16xf32>
    %124 = arith.select %117, %108, %123 : vector<4x16xi1>, vector<4x16xf32>
    %125 = arith.mulf %124, %122 : vector<4x16xf32>
    %c0_40 = arith.constant 0 : index
    %c0_41 = arith.constant 0 : index
    %c0_42 = arith.constant 0 : index
    %126 = vector.load %arg7[%c0_40, %c0_41, %c0_42] : memref<1x1x128xf32, #tpu.memory_space<vmem>>, vector<1x1x128xf32>
    %127 = vector.shape_cast %125 : vector<4x16xf32> to vector<1x4x16xf32>
    %cst_43 = arith.constant dense<0.000000e+00> : vector<1xf32>
    %128 = vector.multi_reduction <add>, %127, %cst_43 [1, 2] : vector<1x4x16xf32> to vector<1xf32>
    %129 = vector.shape_cast %128 : vector<1xf32> to vector<1x1x1xf32>
    %130 = vector.extract %129[0, 0, 0] : f32 from vector<1x1x1xf32>
    %131 = vector.broadcast %130 : f32 to vector<1x1x128xf32>
    %132 = arith.addf %126, %131 : vector<1x1x128xf32>
    %c0_44 = arith.constant 0 : index
    %c0_45 = arith.constant 0 : index
    %c0_46 = arith.constant 0 : index
    %133 = vector.load %arg7[%c0_44, %c0_45, %c0_46] : memref<1x1x128xf32, #tpu.memory_space<vmem>>, vector<1x1x128xf32>
    tpu.vector_store %arg7[%c0_44, %c0_45, %c0_46], %132 {strides = array<i32>} : memref<1x1x128xf32, #tpu.memory_space<vmem>>, vector<1x1x128xf32>,
    return
  }
  func.func @transform_0(%arg0: i32, %arg1: i32) -> (i32, i32) {
    %c1_i32 = arith.constant 1 : i32
    %0 = arith.muli %arg0, %c1_i32 : i32
    %1 = arith.addi %0, %arg1 : i32
    %c0_i32 = arith.constant 0 : i32
    %2 = arith.minsi %1, %c0_i32 : i32
    %c0_i32_0 = arith.constant 0 : i32
    %c0_i32_1 = arith.constant 0 : i32
    return %c0_i32_0, %2 : i32, i32
  }
  func.func @transform_1(%arg0: i32, %arg1: i32) -> (i32, i32) {
    %c1_i32 = arith.constant 1 : i32
    %0 = arith.muli %arg0, %c1_i32 : i32
    %1 = arith.addi %0, %arg1 : i32
    %c0_i32 = arith.constant 0 : i32
    %2 = arith.minsi %1, %c0_i32 : i32
    %c0_i32_0 = arith.constant 0 : i32
    %c0_i32_1 = arith.constant 0 : i32
    return %c0_i32_0, %2 : i32, i32
  }
  func.func @transform_2(%arg0: i32, %arg1: i32) -> (i32, i32) {
    %c1_i32 = arith.constant 1 : i32
    %0 = arith.muli %arg0, %c1_i32 : i32
    %1 = arith.addi %0, %arg1 : i32
    %c0_i32 = arith.constant 0 : i32
    %2 = arith.minsi %1, %c0_i32 : i32
    %c0_i32_0 = arith.constant 0 : i32
    %c0_i32_1 = arith.constant 0 : i32
    return %c0_i32_0, %2 : i32, i32
  }
  func.func @transform_3(%arg0: i32, %arg1: i32) -> (i32, i32) {
    %c1_i32 = arith.constant 1 : i32
    %0 = arith.muli %arg0, %c1_i32 : i32
    %1 = arith.addi %0, %arg1 : i32
    %c0_i32 = arith.constant 0 : i32
    %2 = arith.minsi %1, %c0_i32 : i32
    %c0_i32_0 = arith.constant 0 : i32
    %c0_i32_1 = arith.constant 0 : i32
    return %c0_i32_0, %2 : i32, i32
  }
  func.func @transform_4(%arg0: i32, %arg1: i32) -> (i32, i32) {
    %c1_i32 = arith.constant 1 : i32
    %0 = arith.muli %arg0, %c1_i32 : i32
    %1 = arith.addi %0, %arg1 : i32
    %c0_i32 = arith.constant 0 : i32
    %2 = arith.minsi %1, %c0_i32 : i32
    %c0_i32_0 = arith.constant 0 : i32
    %c0_i32_1 = arith.constant 0 : i32
    return %c0_i32_0, %2 : i32, i32
  }
  func.func @transform_5(%arg0: i32, %arg1: i32) -> (i32, i32, i32) {
    %c0_i32 = arith.constant 0 : i32
    %c0_i32_0 = arith.constant 0 : i32
    %c0_i32_1 = arith.constant 0 : i32
    return %arg0, %c0_i32, %c0_i32_0 : i32, i32, i32
  }
}

</mosaic_0001>

<bundles_post_ra>
// kernel: tpu_custom_call.1
= control target key start
LH: loop header
LB: loop body
LE: loop exit
PB: predicated region body
PF: predicated region fallthrough
CT: control target
= control target key end

     0   :  { %10 = vsyncpa [#allocation3], 0  ;;  %s574_s0 = inlined_call_operand.hbm [shape: f32[4,16], index: 0, kind: input, shape index: {}]   ;;  %s575_s1 = inlined_call_operand.hbm [shape: f32[4,16], index: 1, kind: input, shape index: {}]   ;;  %s576_s2 = inlined_call_operand.hbm [shape: f32[4,16], index: 2, kind: input, shape index: {}]   ;;  %s577_s3 = inlined_call_operand.hbm [shape: f32[4,16], index: 3, kind: input, shape index: {}]   ;;  %s578_s4 = inlined_call_operand.hbm [shape: f32[4,16], index: 4, kind: input, shape index: {}]   ;;  %s579_s5 = inlined_call_operand.hbm [shape: f32[1,1,128], index: 5, kind: output, shape index: {}]  }
   0x1   :  { %11 = vsyncpa [#allocation6], 0 }
   0x2   :  { %12 = vsyncpa [#allocation9], 0  ;;  %s40_s20 = sshll.u32 %s575_s1, 4  ;;  %s41_s20 = int_to_ptr.hbm [resolvable:$true] %s40_s20 }
   0x3   :  { %13 = vsyncpa [#allocation4], 0  ;;  %s471_s21 = smov [#allocation5]   ;;  %s72_s25 = sshll.u32 %s577_s3, 4  ;;  %s73_s25 = int_to_ptr.hbm [resolvable:$true] %s72_s25 }
   0x4   :  { %s42_s22 = sshll.u32 %s471_s21, 4  ;;  %s472_s26 = smov [#allocation8]   ;;  %s43_s22 = int_to_ptr.vmem [resolvable:$true] %s42_s22 }
   0x5   :  { %45 = dma.hbm_to_vmem [thread:$0]  %s41_s20, 64, %s43_s22, [#allocation6]  }
   0x6   :  { %s74_s27 = sshll.u32 %s472_s26, 4  ;;  %s24_s30 = sshll.u32 %s574_s0, 4  ;;  %s75_s27 = int_to_ptr.vmem [resolvable:$true] %s74_s27  ;;  %s25_s30 = int_to_ptr.hbm [resolvable:$true] %s24_s30 }
   0x7   :  { %77 = dma.hbm_to_vmem [thread:$0]  %s73_s25, 64, %s75_s27, [#allocation9]  }
   0x8   :  { %s56_s7 = sshll.u32 %s576_s2, 4  ;;  %s473_s8 = smov [#allocation2]   ;;  %s57_s7 = int_to_ptr.hbm [resolvable:$true] %s56_s7 }
   0x9   :  { %s26_s9 = sshll.u32 %s473_s8, 4  ;;  %s474_s3 = smov [#allocation7]   ;;  %s27_s9 = int_to_ptr.vmem [resolvable:$true] %s26_s9 }
   0xa   :  { %29 = dma.hbm_to_vmem [thread:$0]  %s25_s30, 64, %s27_s9, [#allocation3]  }
   0xb   :  { %s58_s10 = sshll.u32 %s474_s3, 4  ;;  %s88_s13 = sshll.u32 %s578_s4, 4  ;;  %s59_s10 = int_to_ptr.vmem [resolvable:$true] %s58_s10  ;;  %s89_s13 = int_to_ptr.hbm [resolvable:$true] %s88_s13 }
   0xc   :  { %61 = dma.hbm_to_vmem [thread:$0]  %s57_s7, 64, %s59_s10, [#allocation6]  }
   0xd   :  { %s475_s0 = smov [#allocation10]  }
   0xe   :  { %s90_s14 = sshll.u32 %s475_s0, 4  ;;  %s91_s14 = int_to_ptr.vmem [resolvable:$true] %s90_s14 }
   0xf   :  { %93 = dma.hbm_to_vmem [thread:$0]  %s89_s13, 64, %s91_s14, [#allocation9]  }
  0x10   :  { %463 = dma.done.wait [#allocation3], 64  }
  0x11   :  { %464 = vsyncadd [#allocation3], 4294967232 }
  0x12   :  { %465 = dma.done.wait [#allocation6], 128  }
  0x13   :  { %466 = vsyncadd [#allocation6], 4294967168 }
  0x14   :  { %467 = dma.done.wait [#allocation9], 128  }
  0x15   :  { %468 = vsyncadd [#allocation9], 4294967168  ;;  %v476_v0 = vmov 0.0   ;;  %v524_v1 = vld [vmem:[#allocation5] sm:$0xf]  ;;  %vm246_vm6 = vcmask 125952  }
  0x16   :  { %133 = vst [vmem:[#allocation11] sm:$0x1] %v476_v0  ;;  %v159_v2 = vadd.f32 1.0, %v524_v1  ;;  %v134_v3 = vld [vmem:[#allocation2] sm:$0xf]  ;;  %v163_v4 = vadd.f32 2.0, %v524_v1 }
  0x17   :  { %v138_v5 = vld [vmem:[#allocation10] sm:$0xf]  ;;  %v529_v6 = vadd.f32 0.5, %v524_v1  ;;  %v161_v8 = vadd.f32 1.5, %v524_v1  ;;  %v167_v9 = vadd.f32 3.0, %v524_v1  ;;  %v171_v11 = vadd.f32 4.0, %v524_v1 }
  0x18   :  { %v160_v7 = vmul.f32 %v159_v2, %v524_v1  ;;  %v535_v12 = vsub.f32 %v134_v3, %v138_v5  ;;  %v538_v13 = vadd.f32 7.0, %v524_v1  ;;  %v541_v14 = vadd.f32 7.5, %v524_v1  ;;  %v543_v15 = vld [vmem:[#allocation7] sm:$0xf]  ;;  %v137_v16 = vld [vmem:[#allocation8] sm:$0xf] }
  0x19   :  { %v162_v17 = vmul.f32 %v161_v8, %v529_v6  ;;  %v165_v18 = vadd.f32 2.5, %v524_v1  ;;  %v175_v20 = vadd.f32 5.0, %v524_v1  ;;  %v179_v22 = vadd.f32 6.0, %v524_v1  ;;  %s478_s2 = smov [#allocation11]   ;;  %s267_s17 = sshll.u32 %s579_s5, 4  ;;  %s268_s17 = int_to_ptr.hbm [resolvable:$true] %s267_s17 }
  0x1a   :  { %v164_v10 = vmul.f32 %v163_v4, %v160_v7  ;;  %301 = vrcp.f32 %v538_v13  ;;  %v140_v23 = vmul.f32 2.0, %v137_v16  ;;  %v141_v24 = vadd.f32 1.0, %v543_v15  ;;  %s265_s4 = sshll.u32 %s478_s2, 4  ;;  %s266_s4 = int_to_ptr.vmem [resolvable:$true] %s265_s4 }
  0x1b   :  { %v152_v25 = vmul.f32 %v535_v12, %v543_v15  ;;  %303 = vrcp.f32 %v541_v14  ;;  %v166_v26 = vmul.f32 %v165_v18, %v162_v17  ;;  %v169_v27 = vadd.f32 3.5, %v524_v1 }
  0x1c   :  { %v168_v19 = vmul.f32 %v167_v9, %v164_v10  ;;  %305 = vlog2.f32 %v538_v13  ;;  %v142_v30 = vmul.f32 %v141_v24, %v140_v23  ;;  %v173_v34 = vadd.f32 4.5, %v524_v1 }
  0x1d   :  { %v153_v31 = vmul.f32 %v152_v25, %v535_v12  ;;  %307 = vlog2.f32 %v541_v14  ;;  %v170_v33 = vmul.f32 %v169_v27, %v166_v26  ;;  %v177_v40 = vadd.f32 5.5, %v524_v1 }
  0x1e   :  { %v172_v21 = vmul.f32 %v171_v11, %v168_v19  ;;  %v181_v44 = vadd.f32 6.5, %v524_v1  ;;  %v289_v45 = vadd.f32 -0.5, %v538_v13  ;;  %v290_v46 = vadd.f32 -0.5, %v541_v14 }
  0x1f   :  { %v154_v36 = vadd.f32 %v153_v31, %v142_v30  ;;  %v174_v39 = vmul.f32 %v173_v34, %v170_v33  ;;  %v228_v24 = vmul.f32 2.0, %v543_v15  ;;  %v232_v25 = vlaneseq }
  0x20   :  { %v176_v28 = vmul.f32 %v175_v20, %v172_v21  ;;  %v302_v32 = vpop.eup %301 }
  0x21   :  { %v304_v35 = vpop.eup %303  ;;  %v192_v37 = vmul.f32 %v302_v32, %v302_v32  ;;  %v178_v51 = vmul.f32 %v177_v40, %v174_v39  ;;  %v235_v33 = vand.u32 127, %v232_v25 }
  0x22   :  { %v180_v29 = vmul.f32 %v179_v22, %v176_v28  ;;  %v306_v38 = vpop.eup %305  ;;  %v202_v41 = vmul.f32 %v304_v35, %v304_v35 }
  0x23   :  { %v308_v42 = vpop.eup %307  ;;  %v193_v48 = vmul.f32 0.0027777778, %v192_v37  ;;  %v189_v52 = vmul.f32 0.6931472, %v306_v38  ;;  %v182_v3 = vmul.f32 %v181_v44, %v178_v51  ;;  %vm240_vm5 = vcmp.lt.s32.totalorder %v235_v33, 16 }
  0x24   :  { %309 = vrcp.f32 %v180_v29  ;;  %v219_v50 = vand.u32 2147483648, %v180_v29  ;;  %v199_v53 = vmul.f32 0.6931472, %v308_v42  ;;  %v203_v54 = vmul.f32 0.0027777778, %v202_v41 }
  0x25   :  { %311 = vlog2.f32 %v543_v15  ;;  %vm213_vm0 = vweird.f32 %v180_v29  ;;  %v217_v56 = vand.u32 2147483647, %v180_v29  ;;  %v194_v59 = vsub.f32 0.083333336, %v193_v48 }
  0x26   :  { %313 = vlog2.f32 %v142_v30  ;;  %v190_v61 = vmul.f32 %v289_v45, %v189_v52  ;;  %v200_v62 = vmul.f32 %v290_v46, %v199_v53  ;;  %v204_v63 = vsub.f32 0.083333336, %v203_v54  ;;  %v245_v46 = vld [vmem:[#allocation11] sm:$0x1] }
  0x27   :  { %315 = vlog2.f32 %v154_v36  ;;  %v220_v0 = vor.u32 1.1754944e-38, %v219_v50  ;;  %vm218_vm3 = vcmp.eq.f32.partialorder %v217_v56, 8.507059e+37  ;;  %v195_v8 = vmul.f32 %v302_v32, %v194_v59 }
  0x28   :  { %v191_v10 = vsub.f32 %v190_v61, %v538_v13  ;;  %v201_v11 = vsub.f32 %v200_v62, %v541_v14  ;;  %v205_v16 = vmul.f32 %v304_v35, %v204_v63  ;;  %v227_v13 = vand.u32 2147483647, %v535_v12 }
  0x29   :  { %v229_v14 = vadd.f32 %v228_v24, %v524_v1  ;;  %v233_v30 = vshrl.u32 %v232_v25, 7  ;;  %v477_v37 = vmov 0.020833334  }
  0x2a   :  { %v310_v43 = vpop.eup %309  ;;  %v196_v22 = vadd.f32 %v195_v8, %v191_v10  ;;  %v206_v23 = vadd.f32 %v205_v16, %v201_v11 }
  0x2b   :  { %v312_v47 = vpop.eup %311  ;;  %v209_v49 = vmul.f32 %v310_v43, %v180_v29  ;;  %vm214_vm1 = vweird.f32 %v310_v43  ;;  %v230_v35 = vmul.f32 %v229_v14, %v227_v13  ;;  %vm241_vm4 = vcmp.eq.s32.totalorder %v233_v30, 3 }
  0x2c   :  { %v144_v57 = vmul.f32 0.6931472, %v312_v47  ;;  %v314_v58 = vpop.eup %313  ;;  %vm215_vm2 = vmor %vm213_vm0, %vm214_vm1  ;;  %v207_v28 = vsub.f32 %v196_v22, %v206_v23  ;;  %v242_v38 = vsel %vm241_vm4, 0.3125, %v477_v37 }
  0x2d   :  { %v210_v55 = vsub.f32 1.0, %v209_v49  ;;  %v316_v2 = vpop.eup %315  ;;  %v148_v7 = vmul.f32 0.6931472, %v314_v58 }
  0x2e   :  { %v145_v5 = vsub.f32 1.1447299, %v144_v57  ;;  %v156_v21 = vmul.f32 0.6931472, %v316_v2 }
  0x2f   :  { %v211_v60 = vmul.f32 %v310_v43, %v210_v55  ;;  %v149_v20 = vmul.f32 %v148_v7, %v524_v1 }
  0x30   :  { %v146_v19 = vmul.f32 0.5, %v145_v5  ;;  %v157_v27 = vmul.f32 %v156_v21, %v529_v6 }
  0x31   :  { %v212_v4 = vadd.f32 %v310_v43, %v211_v60 }
  0x32   :  { %v150_v26 = vsub.f32 %v146_v19, %v149_v20 }
  0x33   :  { %v216_v9 = vsel %vm215_vm2, %v310_v43, %v212_v4 }
  0x34   :  { %v221_v17 = vsel %vm218_vm3, %v220_v0, %v216_v9  ;;  %v158_v31 = vadd.f32 %v157_v27, %v150_v26 }
  0x35   :  { %v222_v18 = vmul.f32 %v221_v17, %v182_v3 }
  0x37   :  { %317 = vlog2.f32 %v222_v18 }
  0x3d   :  { %v318_v29 = vpop.eup %317 }
  0x3e   :  { %v224_v32 = vmul.f32 0.6931472, %v318_v29 }
  0x40   :  { %v225_v34 = vadd.f32 %v224_v32, %v207_v28 }
  0x42   :  { %v226_v36 = vadd.f32 %v225_v34, %v158_v31 }
  0x44   :  { %v231_v15 = vadd.f32 %v230_v35, %v226_v36 }
  0x46   :  { %v243_v39 = vsel %vm240_vm5, %v231_v15, 0.0 }
  0x47   :  { %v244_v6 = vmul.f32 %v243_v39, %v242_v38 }
  0x49   :  { %v247_v40 = vsel %vm246_vm6, %v244_v6, 0.0 }
  0x4a   :  { %248 = vadd.xlane.f32.xlu0 %v247_v40 }
  0xbd   :  { %v249_v12 = vpop.xlane.xlu0 %248 }
  0xbe   :  { %v250_v1 = vrot.slane %v249_v12, 4 }
  0xc0   :  { %v251_v41 = vadd.f32 %v250_v1, %v249_v12 }
  0xc2   :  { %v252_v42 = vrot.slane %v251_v41, 2 }
  0xc4   :  { %v253_v43 = vadd.f32 %v252_v42, %v251_v41 }
  0xc6   :  { %v254_v44 = vrot.slane %v253_v43, 1 }
  0xc8   :  { %v255_v45 = vadd.f32 %v254_v44, %v253_v43 }
  0xca   :  { %291 = vpush %v255_v45 }
  0xfb   :  { %s292_s18 = spop %291 }
  0xfc   :  { %v257_v47 = vstv %s292_s18 }
  0xfd   :  { %v258_v48 = vadd.f32 %v257_v47, %v245_v46 }
  0xff   :  { %259 = vst [vmem:[#allocation11] sm:$0x1] %v258_v48 }
 0x100   :  { %270 = dma.vmem_to_hbm [thread:$0]  %s266_s4, 16, %s268_s17, [#allocation4]  }
 0x101   :  { %469 = dma.done.wait [#allocation4], 16  }
 0x102   :  { %470 = vsyncadd [#allocation4], 4294967280 }
 0x103   :  { %275 = vsyncpa [#allocation3], 1 }
 0x104   :  { %276 = vsyncpa [#allocation6], 1 }
 0x105   :  { %277 = vsyncpa [#allocation9], 1 }
 0x106   :  { %278 = vsyncpa [#allocation4], 1 }

</bundles_post_ra>
